<compile_context>
chip_gen: v5e
topology: v5e:2x2
jax: 0.10.0
libtpu: 0.0.40
codegen_flags: <defaults>
</compile_context>

<pallas_src>
import jax
import jax.numpy as jnp
from jax.experimental import pallas as pl
from jax.experimental.pallas import tpu as pltpu


# ----------------------------------------------------------------------------
# Kernel: single invocation, everything resident in VMEM, fully fused network.
# ----------------------------------------------------------------------------
def _multiagent_fused_kernel(x_ref, w1_ref, b1_ref, w2_ref, b2_ref,
                             w3_ref, b3_ref, act_ref, val_ref):
    num_zones = act_ref.shape[-1]
    h = jnp.tanh(
        jnp.dot(x_ref[...], w1_ref[...], preferred_element_type=jnp.float32)
        + b1_ref[...])                                                # (B, Z*2H)
    h = jnp.tanh(
        jnp.dot(h, w2_ref[...], preferred_element_type=jnp.float32)
        + b2_ref[...])                                                # (B, Z*2H)
    y = (jnp.dot(h, w3_ref[...], preferred_element_type=jnp.float32)
         + b3_ref[...])                                               # (B, 2Z)
    act_ref[...] = y[:, :num_zones]                                   # (B, Z)
    val_ref[...] = y[:, num_zones:]                                   # (B, Z)


# ----------------------------------------------------------------------------
# One-time weight packing (call at parameter creation / update time, NOT per
# forward).  Builds block-diagonal weights so the whole module is one MLP:
#   cols [0 : Z)  of the final layer = actions,  [Z : 2Z) = values.
# ----------------------------------------------------------------------------
def fuse_params(actor_params, critic_params):
    ap, cp = actor_params, critic_params
    Z, F, H = ap["w1"].shape
    ZF, Z2H = Z * F, Z * 2 * H

    w1 = jnp.zeros((ZF, Z2H), jnp.float32)
    b1 = jnp.zeros((1, Z2H), jnp.float32)
    w2 = jnp.zeros((Z2H, Z2H), jnp.float32)
    b2 = jnp.zeros((1, Z2H), jnp.float32)
    w3 = jnp.zeros((Z2H, 2 * Z), jnp.float32)
    b3 = jnp.zeros((1, 2 * Z), jnp.float32)

    for z in range(Z):
        r = z * F          # layer-1 input-row block for zone z
        c = z * 2 * H      # hidden-column block for zone z (actor | critic)
        w1 = w1.at[r:r + F, c:c + H].set(ap["w1"][z])
        w1 = w1.at[r:r + F, c + H:c + 2 * H].set(cp["w1"][z])
        b1 = b1.at[:, c:c + H].set(ap["b1"][z])
        b1 = b1.at[:, c + H:c + 2 * H].set(cp["b1"][z])

        w2 = w2.at[c:c + H, c:c + H].set(ap["w2"][z])
        w2 = w2.at[c + H:c + 2 * H, c + H:c + 2 * H].set(cp["w2"][z])
        b2 = b2.at[:, c:c + H].set(ap["b2"][z])
        b2 = b2.at[:, c + H:c + 2 * H].set(cp["b2"][z])

        w3 = w3.at[c:c + H, z:z + 1].set(ap["w3"][z])
        w3 = w3.at[c + H:c + 2 * H, Z + z:Z + z + 1].set(cp["w3"][z])
        b3 = b3.at[:, z].set(ap["b3"][z][0, 0])
        b3 = b3.at[:, Z + z].set(cp["b3"][z][0, 0])

    return w1, b1, w2, b2, w3, b3


def pack_features(features, control_zones):
    """Dict of per-zone (B, F) features -> single (B, Z*F) slab."""
    return jnp.concatenate([features[z] for z in control_zones], axis=-1)


# ----------------------------------------------------------------------------
# Hot path: jitted, takes cached fused params, zero wrapper-side XLA relayout.
# ----------------------------------------------------------------------------
@jax.jit
def multiagent_forward_fused(x_cat, fused_params):
    """x_cat: (B, Z*F) zone-concatenated features.  Returns (actions, values): (B, Z)."""
    w1, b1, w2, b2, w3, b3 = fused_params
    B = x_cat.shape[0]
    Z = w3.shape[-1] // 2

    # NOTE: B=8 and Z*2H=384 land on legal f32 (8, 128) tiles; other batch
    # sizes remain correct (masked sublanes), just slightly less efficient.
    vmem = pl.BlockSpec(memory_space=pltpu.MemorySpace.VMEM)

    flops = 2 * B * (w1.shape[0] * w1.shape[1]
                     + w2.shape[0] * w2.shape[1]
                     + w3.shape[0] * w3.shape[1])
    transcendentals = 2 * B * w1.shape[1]
    bytes_accessed = 4 * (x_cat.size + w1.size + b1.size + w2.size + b2.size
                          + w3.size + b3.size + 2 * B * Z)

    actions, values = pl.pallas_call(
        _multiagent_fused_kernel,
        out_shape=(jax.ShapeDtypeStruct((B, Z), jnp.float32),
                   jax.ShapeDtypeStruct((B, Z), jnp.float32)),
        in_specs=[vmem] * 7,
        out_specs=(vmem, vmem),
        cost_estimate=pl.CostEstimate(flops=flops,
                                      transcendentals=transcendentals,
                                      bytes_accessed=bytes_accessed),
    )(x_cat, w1, b1, w2, b2, w3, b3)
    return actions, values


def multiagent_forward(features, control_zones, actor_params, critic_params):
    """Convenience path (re-fuses weights; do NOT use per-step in a training loop)."""
    fused = fuse_params(actor_params, critic_params)
    return multiagent_forward_fused(pack_features(features, control_zones), fused)


# ----------------------------------------------------------------------------
# Test scaffolding.
# ----------------------------------------------------------------------------
def _init_stacked_params(key, num_zones, feature_dim, hidden=64):
    ks = jax.random.split(key, 6)
    scale = 0.1
    return {
        "w1": scale * jax.random.normal(ks[0], (num_zones, feature_dim, hidden), jnp.float32),
        "b1": scale * jax.random.normal(ks[1], (num_zones, 1, hidden), jnp.float32),
        "w2": scale * jax.random.normal(ks[2], (num_zones, hidden, hidden), jnp.float32),
        "b2": scale * jax.random.normal(ks[3], (num_zones, 1, hidden), jnp.float32),
        "w3": scale * jax.random.normal(ks[4], (num_zones, hidden, 1), jnp.float32),
        "b3": scale * jax.random.normal(ks[5], (num_zones, 1, 1), jnp.float32),
    }


def _reference_forward(features, control_zones, ap, cp):
    # Pure-JAX reference of the PyTorch forward (independent per-zone MLPs).
    def mlp(xz, p, z):
        h = jnp.tanh(xz @ p["w1"][z] + p["b1"][z])
        h = jnp.tanh(h @ p["w2"][z] + p["b2"][z])
        return h @ p["w3"][z] + p["b3"][z]            # (B, 1)

    acts = jnp.concatenate(
        [mlp(features[zone], ap, i) for i, zone in enumerate(control_zones)], axis=1)
    vals = jnp.concatenate(
        [mlp(features[zone], cp, i) for i, zone in enumerate(control_zones)], axis=1)
    return acts, vals


if __name__ == "__main__":
    # Small shapes consistent with the module: feature_dim=32, 3 zones, batch=8.
    FEATURE_DIM = 32
    CONTROL_ZONES = ["zone_a", "zone_b", "zone_c"]
    BATCH = 8
    Z = len(CONTROL_ZONES)

    key = jax.random.PRNGKey(0)
    k_feat, k_actor, k_critic = jax.random.split(key, 3)

    feat_keys = jax.random.split(k_feat, Z)
    features = {
        zone: jax.random.normal(feat_keys[i], (BATCH, FEATURE_DIM), jnp.float32)
        for i, zone in enumerate(CONTROL_ZONES)
    }

    actor_params = _init_stacked_params(k_actor, Z, FEATURE_DIM)
    critic_params = _init_stacked_params(k_critic, Z, FEATURE_DIM)

    # Fuse ONCE (off the hot path) and cache.
    fused = jax.block_until_ready(fuse_params(actor_params, critic_params))

    # Hot path: one concat to pack features + one Pallas call, nothing else.
    x_cat = pack_features(features, CONTROL_ZONES)          # (B, Z*F)
    actions, values = multiagent_forward_fused(x_cat, fused)
    jax.block_until_ready((actions, values))

    ref_actions, ref_values = _reference_forward(features, CONTROL_ZONES,
                                                 actor_params, critic_params)
    assert actions.shape == (BATCH, Z) and values.shape == (BATCH, Z)
    assert jnp.allclose(actions, ref_actions, atol=5e-5, rtol=5e-5)
    assert jnp.allclose(values, ref_values, atol=5e-5, rtol=5e-5)

    print("KERNEL_OK")
</pallas_src>

<mosaic_0001>
module attributes {stable_mosaic.version = 11 : i64} {
  func.func @_multiagent_fused_kernel(%arg0: memref<8x96xf32, #tpu.memory_space<vmem>>, %arg1: memref<96x384xf32, #tpu.memory_space<vmem>>, %arg2: memref<1x384xf32, #tpu.memory_space<vmem>>, %arg3: memref<384x384xf32, #tpu.memory_space<vmem>>, %arg4: memref<1x384xf32, #tpu.memory_space<vmem>>, %arg5: memref<384x6xf32, #tpu.memory_space<vmem>>, %arg6: memref<1x6xf32, #tpu.memory_space<vmem>>, %arg7: memref<8x3xf32, #tpu.memory_space<vmem>>, %arg8: memref<8x3xf32, #tpu.memory_space<vmem>>) attributes {dimension_semantics = [], scalar_prefetch = 0 : i64, scratch_operands = 0 : i64, tpu.core_type = #tpu.core_type<tc>} {
    %c0 = arith.constant 0 : index
    %c0_0 = arith.constant 0 : index
    %0 = vector.load %arg0[%c0, %c0_0] : memref<8x96xf32, #tpu.memory_space<vmem>>, vector<8x96xf32>
    %c0_1 = arith.constant 0 : index
    %c0_2 = arith.constant 0 : index
    %1 = vector.load %arg1[%c0_1, %c0_2] : memref<96x384xf32, #tpu.memory_space<vmem>>, vector<96x384xf32>
    %cst = arith.constant dense<0.000000e+00> : vector<8x384xf32>
    %2 = tpu.matmul %0, %1, %cst {dimension_numbers = #tpu.dot_dimension_numbers<[1], [0], [0], [1], [0, 0, 1, 1], [], []>} : vector<8x96xf32>, vector<96x384xf32>, vector<8x384xf32> -> vector<8x384xf32>
    %c0_3 = arith.constant 0 : index
    %c0_4 = arith.constant 0 : index
    %3 = vector.load %arg2[%c0_3, %c0_4] : memref<1x384xf32, #tpu.memory_space<vmem>>, vector<1x384xf32>
    %4 = vector.broadcast %3 : vector<1x384xf32> to vector<8x384xf32>
    %5 = arith.addf %2, %4 : vector<8x384xf32>
    %6 = math.tanh %5 : vector<8x384xf32>
    %c0_5 = arith.constant 0 : index
    %c0_6 = arith.constant 0 : index
    %7 = vector.load %arg3[%c0_5, %c0_6] : memref<384x384xf32, #tpu.memory_space<vmem>>, vector<384x384xf32>
    %cst_7 = arith.constant dense<0.000000e+00> : vector<8x384xf32>
    %8 = tpu.matmul %6, %7, %cst_7 {dimension_numbers = #tpu.dot_dimension_numbers<[1], [0], [0], [1], [0, 0, 1, 1], [], []>} : vector<8x384xf32>, vector<384x384xf32>, vector<8x384xf32> -> vector<8x384xf32>
    %c0_8 = arith.constant 0 : index
    %c0_9 = arith.constant 0 : index
    %9 = vector.load %arg4[%c0_8, %c0_9] : memref<1x384xf32, #tpu.memory_space<vmem>>, vector<1x384xf32>
    %10 = vector.broadcast %9 : vector<1x384xf32> to vector<8x384xf32>
    %11 = arith.addf %8, %10 : vector<8x384xf32>
    %12 = math.tanh %11 : vector<8x384xf32>
    %c0_10 = arith.constant 0 : index
    %c0_11 = arith.constant 0 : index
    %13 = vector.load %arg5[%c0_10, %c0_11] : memref<384x6xf32, #tpu.memory_space<vmem>>, vector<384x6xf32>
    %cst_12 = arith.constant dense<0.000000e+00> : vector<8x6xf32>
    %14 = tpu.matmul %12, %13, %cst_12 {dimension_numbers = #tpu.dot_dimension_numbers<[1], [0], [0], [1], [0, 0, 1, 1], [], []>} : vector<8x384xf32>, vector<384x6xf32>, vector<8x6xf32> -> vector<8x6xf32>
    %c0_13 = arith.constant 0 : index
    %c0_14 = arith.constant 0 : index
    %15 = vector.load %arg6[%c0_13, %c0_14] : memref<1x6xf32, #tpu.memory_space<vmem>>, vector<1x6xf32>
    %16 = vector.broadcast %15 : vector<1x6xf32> to vector<8x6xf32>
    %17 = arith.addf %14, %16 : vector<8x6xf32>
    %18 = vector.extract_strided_slice %17 {offsets = [0, 0], sizes = [8, 3], strides = [1, 1]} : vector<8x6xf32> to vector<8x3xf32>
    %c0_15 = arith.constant 0 : index
    %c0_16 = arith.constant 0 : index
    %19 = vector.load %arg7[%c0_15, %c0_16] : memref<8x3xf32, #tpu.memory_space<vmem>>, vector<8x3xf32>
    tpu.vector_store %arg7[%c0_15, %c0_16], %18 {strides = array<i32>} : memref<8x3xf32, #tpu.memory_space<vmem>>, vector<8x3xf32>,
    %20 = vector.extract_strided_slice %17 {offsets = [0, 3], sizes = [8, 3], strides = [1, 1]} : vector<8x6xf32> to vector<8x3xf32>
    %c0_17 = arith.constant 0 : index
    %c0_18 = arith.constant 0 : index
    %21 = vector.load %arg8[%c0_17, %c0_18] : memref<8x3xf32, #tpu.memory_space<vmem>>, vector<8x3xf32>
    tpu.vector_store %arg8[%c0_17, %c0_18], %20 {strides = array<i32>} : memref<8x3xf32, #tpu.memory_space<vmem>>, vector<8x3xf32>,
    return
  }
}

</mosaic_0001>

<bundles_post_ra>
// kernel: multiagent_forward_fused.1
= control target key start
LH: loop header
LB: loop body
LE: loop exit
PB: predicated region body
PF: predicated region fallthrough
CT: control target
= control target key end

     0   :  { %14 = vsyncpa [#allocation3], 0  ;;  %s665_s30 = smov [#allocation2]   ;;  %s666_s10 = smov 384   ;;  %s990_s0 = inlined_call_operand.vmem [shape: f32[8,96], index: 0, kind: input, shape index: {}]   ;;  %s991_s1 = inlined_call_operand.vmem [shape: f32[96,384], index: 1, kind: input, shape index: {}]   ;;  %s992_s2 = inlined_call_operand.vmem [shape: f32[1,384], index: 2, kind: input, shape index: {}]   ;;  %s993_s3 = inlined_call_operand.hbm [shape: f32[384,384], index: 3, kind: input, shape index: {}]   ;;  %s994_s4 = inlined_call_operand.vmem [shape: f32[1,384], index: 4, kind: input, shape index: {}]   ;;  %s995_s5 = inlined_call_operand.vmem [shape: f32[384,6], index: 5, kind: input, shape index: {}]   ;;  %s996_s6 = inlined_call_operand.vmem [shape: f32[1,6], index: 6, kind: input, shape index: {}]   ;;  %s997_s7 = inlined_call_operand.vmem [shape: f32[8,3], index: 7, kind: output, shape index: {0}]   ;;  %s998_s8 = inlined_call_operand.vmem [shape: f32[8,3], index: 8, kind: output, shape index: {1}]  }
   0x1   :  { %s25_s29 = sshll.u32 %s993_s3, 4  ;;  %s27_s9 = sshll.u32 %s665_s30, 4  ;;  %s26_s29 = int_to_ptr.hbm [resolvable:$true] %s25_s29  ;;  %s28_s9 = int_to_ptr.vmem [resolvable:$true] %s27_s9 }
   0x2   :  { %s667_s11 = smov 24  }
   0x3   :  { %33 = dma.hbm_to_vmem [thread:$0]  %s26_s29, 18432, %s28_s9, [#allocation3], %s666_s10, %s666_s10, %s667_s11  }
   0x4   :  { %663 = dma.done.wait [#allocation3], 18432  }
   0x5   :  { %664 = vsyncadd [#allocation3], 4294948864  ;;  %v78_v0 = vld [vmem:[%s991_s1 + $0x108] sm:$0xff]  ;;  %v80_v1 = vld [vmem:[%s991_s1 + $0x118] sm:$0xff]  ;;  %vm89_vm0 = vcmask 785408   ;;  %vm603_vm1 = vcmask 23552  }
   0x6   :  { %v75_v2 = vld [vmem:[%s991_s1 + $0xf0] sm:$0xff]  ;;  %97 = vmatpush.msra.mxu0 %v78_v0  ;;  %137 = vmatpush.msra.mxu2 %v80_v1  ;;  %v77_v3 = vld [vmem:[%s991_s1 + $0x100] sm:$0xff]  ;;  %v72_v4 = vld [vmem:[%s991_s1 + $0xd8] sm:$0xff]  ;;  %s668_s13 = smov 125  }
   0x7   :  { %v74_v5 = vld [vmem:[%s991_s1 + $0xe8] sm:$0xff]  ;;  %v79_v6 = vld [vmem:[%s991_s1 + $0x110] sm:$0xff]  ;;  %v69_v7 = vld [vmem:[%s991_s1 + $0xc0] sm:$0xff] }
   0x8   :  { %98 = vmatpush.msra.mxu0 %v75_v2  ;;  %138 = vmatpush.msra.mxu2 %v77_v3  ;;  %v71_v8 = vld [vmem:[%s991_s1 + $0xd0] sm:$0xff]  ;;  %v76_v9 = vld [vmem:[%s991_s1 + $0xf8] sm:$0xff]  ;;  %v73_v10 = vld [vmem:[%s991_s1 + $0xe0] sm:$0xff] }
   0x9   :  { %117 = vmatpush.msra.mxu1 %v79_v6  ;;  %v66_v11 = vld [vmem:[%s991_s1 + $0xa8] sm:$0xff]  ;;  %v68_v12 = vld [vmem:[%s991_s1 + $0xb8] sm:$0xff]  ;;  %v63_v14 = vld [vmem:[%s991_s1 + $0x90] sm:$0xff] }
   0xa   :  { %99 = vmatpush.msra.mxu0 %v72_v4  ;;  %139 = vmatpush.msra.mxu2 %v74_v5  ;;  %v70_v13 = vld [vmem:[%s991_s1 + $0xc8] sm:$0xff]  ;;  %v65_v15 = vld [vmem:[%s991_s1 + $0xa0] sm:$0xff]  ;;  %v67_v16 = vld [vmem:[%s991_s1 + $0xb0] sm:$0xff] }
   0xb   :  { %118 = vmatpush.msra.mxu1 %v76_v9  ;;  %v60_v17 = vld [vmem:[%s991_s1 + $0x78] sm:$0xff]  ;;  %v62_v18 = vld [vmem:[%s991_s1 + $0x88] sm:$0xff]  ;;  %v57_v20 = vld [vmem:[%s991_s1 + $0x60] sm:$0xff] }
   0xc   :  { %100 = vmatpush.msra.mxu0 %v69_v7  ;;  %140 = vmatpush.msra.mxu2 %v71_v8  ;;  %v64_v19 = vld [vmem:[%s991_s1 + $0x98] sm:$0xff]  ;;  %v59_v21 = vld [vmem:[%s991_s1 + $0x70] sm:$0xff]  ;;  %v201_v22 = vld [vmem:[#allocation2 + $0x168] sm:$0xff] }
   0xd   :  { %119 = vmatpush.msra.mxu1 %v73_v10  ;;  %v61_v23 = vld [vmem:[%s991_s1 + $0x80] sm:$0xff]  ;;  %v198_v24 = vld [vmem:[#allocation2 + $0x150] sm:$0xff]  ;;  %v54_v25 = vld [vmem:[%s991_s1 + $0x48] sm:$0xff]  ;;  %308 = vmatpush.msra.mxu3 %v201_v22 }
   0xe   :  { %101 = vmatpush.msra.mxu0 %v66_v11  ;;  %141 = vmatpush.msra.mxu2 %v68_v12  ;;  %v56_v26 = vld [vmem:[%s991_s1 + $0x58] sm:$0xff]  ;;  %v58_v27 = vld [vmem:[%s991_s1 + $0x68] sm:$0xff]  ;;  %v51_v29 = vld [vmem:[%s991_s1 + $0x30] sm:$0xff] }
   0xf   :  { %120 = vmatpush.msra.mxu1 %v70_v13  ;;  %v195_v28 = vld [vmem:[#allocation2 + $0x138] sm:$0xff]  ;;  %v53_v30 = vld [vmem:[%s991_s1 + $0x40] sm:$0xff]  ;;  %309 = vmatpush.msra.mxu3 %v198_v24  ;;  %v55_v31 = vld [vmem:[%s991_s1 + $0x50] sm:$0xff] }
  0x10   :  { %102 = vmatpush.msra.mxu0 %v63_v14  ;;  %142 = vmatpush.msra.mxu2 %v65_v15  ;;  %v192_v32 = vld [vmem:[#allocation2 + $0x120] sm:$0xff]  ;;  %v48_v33 = vld [vmem:[%s991_s1 + $0x18] sm:$0xff]  ;;  %v50_v34 = vld [vmem:[%s991_s1 + $0x28] sm:$0xff] }
  0x11   :  { %121 = vmatpush.msra.mxu1 %v67_v16  ;;  %310 = vmatpush.msra.mxu3 %v195_v28  ;;  %v52_v35 = vld [vmem:[%s991_s1 + $0x38] sm:$0xff]  ;;  %v189_v36 = vld [vmem:[#allocation2 + $0x108] sm:$0xff]  ;;  %v45_v37 = vld [vmem:[%s991_s1] sm:$0xff] }
  0x12   :  { %103 = vmatpush.msra.mxu0 %v60_v17  ;;  %143 = vmatpush.msra.mxu2 %v62_v18  ;;  %v47_v38 = vld [vmem:[%s991_s1 + $0x10] sm:$0xff]  ;;  %v44_v39 = vld [vmem:[%s990_s0] sm:$0xff]  ;;  %v249_v43 = vld [vmem:[#allocation2 + $0x2e8] sm:$0xff] }
  0x13   :  { %122 = vmatpush.msra.mxu1 %v64_v19  ;;  %311 = vmatpush.msra.mxu3 %v192_v32  ;;  %v49_v40 = vld [vmem:[%s991_s1 + $0x20] sm:$0xff]  ;;  %v186_v41 = vld [vmem:[#allocation2 + $0xf0] sm:$0xff]  ;;  %v46_v44 = vld [vmem:[%s991_s1 + $0x8] sm:$0xff] }
  0x14   :  { %104 = vmatpush.msra.mxu0 %v57_v20  ;;  %144 = vmatpush.msra.mxu2 %v59_v21  ;;  %v202_v42 = vld [vmem:[#allocation2 + $0x170] sm:$0xff]  ;;  %v183_v45 = vld [vmem:[#allocation2 + $0xd8] sm:$0xff]  ;;  %v180_v47 = vld [vmem:[#allocation2 + $0xc0] sm:$0xff] }
  0x15   :  { %123 = vmatpush.msra.mxu1 %v61_v23  ;;  %312 = vmatpush.msra.mxu3 %v189_v36  ;;  %v199_v46 = vld [vmem:[#allocation2 + $0x158] sm:$0xff]  ;;  %v297_v48 = vld [vmem:[#allocation2 + $0x468] sm:$0xff]  ;;  %v196_v49 = vld [vmem:[#allocation2 + $0x140] sm:$0xff] }
  0x16   :  { %105 = vmatpush.msra.mxu0 %v54_v25  ;;  %145 = vmatpush.msra.mxu2 %v56_v26  ;;  %v246_v50 = vld [vmem:[#allocation2 + $0x2d0] sm:$0xff]  ;;  %v177_v51 = vld [vmem:[#allocation2 + $0xa8] sm:$0xff]  ;;  %v243_v54 = vld [vmem:[#allocation2 + $0x2b8] sm:$0xff] }
  0x17   :  { %124 = vmatpush.msra.mxu1 %v58_v27  ;;  %313 = vmatpush.msra.mxu3 %v186_v41  ;;  %v294_v52 = vld [vmem:[#allocation2 + $0x450] sm:$0xff]  ;;  %v193_v53 = vld [vmem:[#allocation2 + $0x128] sm:$0xff]  ;;  %v291_v56 = vld [vmem:[#allocation2 + $0x438] sm:$0xff] }
  0x18   :  { %106 = vmatpush.msra.mxu0 %v51_v29  ;;  %146 = vmatpush.msra.mxu2 %v53_v30  ;;  %v174_v55 = vld [vmem:[#allocation2 + $0x90] sm:$0xff]  ;;  %v240_v58 = vld [vmem:[#allocation2 + $0x2a0] sm:$0xff]  ;;  %v171_v59 = vld [vmem:[#allocation2 + $0x78] sm:$0xff] }
  0x19   :  { %125 = vmatpush.msra.mxu1 %v55_v31  ;;  %314 = vmatpush.msra.mxu3 %v183_v45  ;;  %v190_v57 = vld [vmem:[#allocation2 + $0x110] sm:$0xff]  ;;  %v288_v60 = vld [vmem:[#allocation2 + $0x420] sm:$0xff]  ;;  %v187_v61 = vld [vmem:[#allocation2 + $0xf8] sm:$0xff] }
  0x1a   :  { %107 = vmatpush.msra.mxu0 %v48_v33  ;;  %147 = vmatpush.msra.mxu2 %v50_v34  ;;  %v237_v62 = vld [vmem:[#allocation2 + $0x288] sm:$0xff]  ;;  %v168_v63 = vld [vmem:[#allocation2 + $0x60] sm:$0xff]  ;;  %v234_v2 = vld [vmem:[#allocation2 + $0x270] sm:$0xff] }
  0x1b   :  { %126 = vmatpush.msra.mxu1 %v52_v35  ;;  %315 = vmatpush.msra.mxu3 %v180_v47  ;;  %v285_v0 = vld [vmem:[#allocation2 + $0x408] sm:$0xff]  ;;  %v184_v1 = vld [vmem:[#allocation2 + $0xe0] sm:$0xff]  ;;  %v282_v4 = vld [vmem:[#allocation2 + $0x3f0] sm:$0xff] }
  0x1c   :  { %108 = vmatpush.msra.mxu0 %v45_v37  ;;  %148 = vmatpush.msra.mxu2 %v47_v38  ;;  %v165_v3 = vld [vmem:[#allocation2 + $0x48] sm:$0xff]  ;;  %v231_v6 = vld [vmem:[#allocation2 + $0x258] sm:$0xff]  ;;  %v162_v7 = vld [vmem:[#allocation2 + $0x30] sm:$0xff] }
  0x1d   :  { %619 = vmatmul.msk.f32.vlgmr.msra.gmra.mxu0 %vm89_vm0, %v44_v39  ;;  %621 = vmatmul.msk.f32.vlgmr.msra.gmra.mxu2 %vm89_vm0, %v44_v39  ;;  %v181_v5 = vld [vmem:[#allocation2 + $0xc8] sm:$0xff]  ;;  %v279_v8 = vld [vmem:[#allocation2 + $0x3d8] sm:$0xff]  ;;  %v178_v9 = vld [vmem:[#allocation2 + $0xb0] sm:$0xff] }
  0x1e   :  { %127 = vmatpush.msra.mxu1 %v49_v40  ;;  %368 = vmatpush.msrb.mxu2 %v202_v42  ;;  %v228_v10 = vld [vmem:[#allocation2 + $0x240] sm:$0xff]  ;;  %v159_v11 = vld [vmem:[#allocation2 + $0x18] sm:$0xff]  ;;  %v225_v14 = vld [vmem:[#allocation2 + $0x228] sm:$0xff] }
  0x1f   :  { %328 = vmatpush.msrb.mxu0 %v249_v43  ;;  %316 = vmatpush.msra.mxu3 %v177_v51  ;;  %v276_v12 = vld [vmem:[#allocation2 + $0x3c0] sm:$0xff]  ;;  %v175_v13 = vld [vmem:[#allocation2 + $0x98] sm:$0xff]  ;;  %v273_v16 = vld [vmem:[#allocation2 + $0x3a8] sm:$0xff] }
  0x20   :  { %128 = vmatpush.msra.mxu1 %v46_v44  ;;  %369 = vmatpush.msrb.mxu2 %v199_v46  ;;  %v156_v15 = vld [vmem:[#allocation2] sm:$0xff]  ;;  %v250_v18 = vld [vmem:[#allocation2 + $0x2f0] sm:$0xff]  ;;  %v169_v21 = vld [vmem:[#allocation2 + $0x68] sm:$0xff] }
  0x21   :  { %620 = vmatmul.msk.f32.vlgmr.msra.gmra.mxu1 %vm89_vm0, %v44_v39  ;;  %329 = vmatpush.msrb.mxu0 %v246_v50  ;;  %v172_v17 = vld [vmem:[#allocation2 + $0x80] sm:$0xff]  ;;  %v270_v19 = vld [vmem:[#allocation2 + $0x390] sm:$0xff]  ;;  %v247_v22 = vld [vmem:[#allocation2 + $0x2d8] sm:$0xff] }
  0x22   :  { %348 = vmatpush.msrb.mxu1 %v297_v48  ;;  %370 = vmatpush.msrb.mxu2 %v196_v49  ;;  %v222_v20 = vld [vmem:[#allocation2 + $0x210] sm:$0xff]  ;;  %v267_v23 = vld [vmem:[#allocation2 + $0x378] sm:$0xff]  ;;  %v244_v26 = vld [vmem:[#allocation2 + $0x2c0] sm:$0xff] }
  0x23   :  { %330 = vmatpush.msrb.mxu0 %v243_v54  ;;  %317 = vmatpush.msra.mxu3 %v174_v55  ;;  %v219_v24 = vld [vmem:[#allocation2 + $0x1f8] sm:$0xff]  ;;  %v166_v25 = vld [vmem:[#allocation2 + $0x50] sm:$0xff]  ;;  %v264_v27 = vld [vmem:[#allocation2 + $0x360] sm:$0xff] }
  0x24   :  { %349 = vmatpush.msrb.mxu1 %v294_v52  ;;  %371 = vmatpush.msrb.mxu2 %v193_v53  ;;  %v216_v28 = vld [vmem:[#allocation2 + $0x1e0] sm:$0xff]  ;;  %v163_v29 = vld [vmem:[#allocation2 + $0x38] sm:$0xff]  ;;  %v241_v30 = vld [vmem:[#allocation2 + $0x2a8] sm:$0xff] }
  0x25   :  { %331 = vmatpush.msrb.mxu0 %v240_v58  ;;  %318 = vmatpush.msra.mxu3 %v171_v59  ;;  %v261_v31 = vld [vmem:[#allocation2 + $0x348] sm:$0xff]  ;;  %v160_v33 = vld [vmem:[#allocation2 + $0x20] sm:$0xff]  ;;  %v238_v34 = vld [vmem:[#allocation2 + $0x290] sm:$0xff] }
  0x26   :  { %350 = vmatpush.msrb.mxu1 %v291_v56  ;;  %372 = vmatpush.msrb.mxu2 %v190_v57  ;;  %v213_v32 = vld [vmem:[#allocation2 + $0x1c8] sm:$0xff]  ;;  %v258_v35 = vld [vmem:[#allocation2 + $0x330] sm:$0xff]  ;;  %v235_v38 = vld [vmem:[#allocation2 + $0x278] sm:$0xff] }
  0x27   :  { %332 = vmatpush.msrb.mxu0 %v237_v62  ;;  %319 = vmatpush.msra.mxu3 %v168_v63  ;;  %v210_v36 = vld [vmem:[#allocation2 + $0x1b0] sm:$0xff]  ;;  %v157_v37 = vld [vmem:[#allocation2 + $0x8] sm:$0xff]  ;;  %v251_v39 = vld [vmem:[#allocation2 + $0x2f8] sm:$0xff] }
  0x28   :  { %351 = vmatpush.msrb.mxu1 %v288_v60  ;;  %373 = vmatpush.msrb.mxu2 %v187_v61  ;;  %v255_v40 = vld [vmem:[#allocation2 + $0x318] sm:$0xff]  ;;  %v232_v41 = vld [vmem:[#allocation2 + $0x260] sm:$0xff]  ;;  %v229_v45 = vld [vmem:[#allocation2 + $0x248] sm:$0xff] }
  0x29   :  { %333 = vmatpush.msrb.mxu0 %v234_v2  ;;  %320 = vmatpush.msra.mxu3 %v165_v3  ;;  %v207_v42 = vld [vmem:[#allocation2 + $0x198] sm:$0xff]  ;;  %v248_v43 = vld [vmem:[#allocation2 + $0x2e0] sm:$0xff]  ;;  %v245_v47 = vld [vmem:[#allocation2 + $0x2c8] sm:$0xff] }
  0x2a   :  { %352 = vmatpush.msrb.mxu1 %v285_v0  ;;  %374 = vmatpush.msrb.mxu2 %v184_v1  ;;  %v252_v44 = vld [vmem:[#allocation2 + $0x300] sm:$0xff]  ;;  %v203_v46 = vld [vmem:[#allocation2 + $0x178] sm:$0xff]  ;;  %v226_v49 = vld [vmem:[#allocation2 + $0x230] sm:$0xff] }
  0x2b   :  { %334 = vmatpush.msrb.mxu0 %v231_v6  ;;  %321 = vmatpush.msra.mxu3 %v162_v7  ;;  %v204_v48 = vld [vmem:[#allocation2 + $0x180] sm:$0xff]  ;;  %v298_v50 = vld [vmem:[#allocation2 + $0x470] sm:$0xff]  ;;  %v223_v53 = vld [vmem:[#allocation2 + $0x218] sm:$0xff] }
  0x2c   :  { %353 = vmatpush.msrb.mxu1 %v282_v4  ;;  %375 = vmatpush.msrb.mxu2 %v181_v5  ;;  %v200_v51 = vld [vmem:[#allocation2 + $0x160] sm:$0xff]  ;;  %v242_v52 = vld [vmem:[#allocation2 + $0x2b0] sm:$0xff]  ;;  %v295_v54 = vld [vmem:[#allocation2 + $0x458] sm:$0xff] }
  0x2d   :  { %335 = vmatpush.msrb.mxu0 %v228_v10  ;;  %322 = vmatpush.msra.mxu3 %v159_v11  ;;  %v197_v55 = vld [vmem:[#allocation2 + $0x148] sm:$0xff]  ;;  %v239_v56 = vld [vmem:[#allocation2 + $0x298] sm:$0xff]  ;;  %v220_v57 = vld [vmem:[#allocation2 + $0x200] sm:$0xff] }
  0x2e   :  { %354 = vmatpush.msrb.mxu1 %v279_v8  ;;  %376 = vmatpush.msrb.mxu2 %v178_v9  ;;  %v292_v58 = vld [vmem:[#allocation2 + $0x440] sm:$0xff]  ;;  %v194_v59 = vld [vmem:[#allocation2 + $0x130] sm:$0xff]  ;;  %v217_v61 = vld [vmem:[#allocation2 + $0x1e8] sm:$0xff] }
  0x2f   :  { %336 = vmatpush.msrb.mxu0 %v225_v14  ;;  %323 = vmatpush.msra.mxu3 %v156_v15  ;;  %v236_v60 = vld [vmem:[#allocation2 + $0x280] sm:$0xff]  ;;  %v289_v62 = vld [vmem:[#allocation2 + $0x428] sm:$0xff]  ;;  %v191_v63 = vld [vmem:[#allocation2 + $0x118] sm:$0xff] }
  0x30   :  { %355 = vmatpush.msrb.mxu1 %v276_v12  ;;  %377 = vmatpush.msrb.mxu2 %v175_v13  ;;  %v233_v0 = vld [vmem:[#allocation2 + $0x268] sm:$0xff]  ;;  %v214_v1 = vld [vmem:[#allocation2 + $0x1d0] sm:$0xff]  ;;  %v188_v3 = vld [vmem:[#allocation2 + $0x100] sm:$0xff] }
  0x31   :  { %388 = vmatpush.msrb.mxu3 %v250_v18  ;;  %337 = vmatpush.msrb.mxu0 %v222_v20  ;;  %v286_v2 = vld [vmem:[#allocation2 + $0x410] sm:$0xff]  ;;  %v211_v5 = vld [vmem:[#allocation2 + $0x1b8] sm:$0xff]  ;;  %v185_v7 = vld [vmem:[#allocation2 + $0xe8] sm:$0xff] }
  0x32   :  { %356 = vmatpush.msrb.mxu1 %v273_v16  ;;  %378 = vmatpush.msrb.mxu2 %v172_v17  ;;  %v230_v4 = vld [vmem:[#allocation2 + $0x250] sm:$0xff]  ;;  %v283_v6 = vld [vmem:[#allocation2 + $0x3f8] sm:$0xff]  ;;  %v208_v9 = vld [vmem:[#allocation2 + $0x1a0] sm:$0xff] }
  0x33   :  { %389 = vmatpush.msrb.mxu3 %v247_v22  ;;  %338 = vmatpush.msrb.mxu0 %v219_v24  ;;  %v227_v8 = vld [vmem:[#allocation2 + $0x238] sm:$0xff]  ;;  %v280_v10 = vld [vmem:[#allocation2 + $0x3e0] sm:$0xff]  ;;  %v182_v11 = vld [vmem:[#allocation2 + $0xd0] sm:$0xff] }
  0x34   :  { %357 = vmatpush.msrb.mxu1 %v270_v19  ;;  %379 = vmatpush.msrb.mxu2 %v169_v21  ;;  %v224_v12 = vld [vmem:[#allocation2 + $0x220] sm:$0xff]  ;;  %v205_v13 = vld [vmem:[#allocation2 + $0x188] sm:$0xff]  ;;  %v179_v15 = vld [vmem:[#allocation2 + $0xb8] sm:$0xff] }
  0x35   :  { %390 = vmatpush.msrb.mxu3 %v244_v26  ;;  %339 = vmatpush.msrb.mxu0 %v216_v28  ;;  %v277_v14 = vld [vmem:[#allocation2 + $0x3c8] sm:$0xff]  ;;  %v274_v17 = vld [vmem:[#allocation2 + $0x3b0] sm:$0xff]  ;;  %v176_v18 = vld [vmem:[#allocation2 + $0xa0] sm:$0xff] }
  0x36   :  { %358 = vmatpush.msrb.mxu1 %v267_v23  ;;  %380 = vmatpush.msrb.mxu2 %v166_v25  ;;  %v221_v16 = vld [vmem:[#allocation2 + $0x208] sm:$0xff]  ;;  %v218_v19 = vld [vmem:[#allocation2 + $0x1f0] sm:$0xff]  ;;  %v271_v20 = vld [vmem:[#allocation2 + $0x398] sm:$0xff] }
  0x37   :  { %391 = vmatpush.msrb.mxu3 %v241_v30  ;;  %340 = vmatpush.msrb.mxu0 %v213_v32  ;;  %v173_v21 = vld [vmem:[#allocation2 + $0x88] sm:$0xff]  ;;  %v215_v22 = vld [vmem:[#allocation2 + $0x1d8] sm:$0xff]  ;;  %v268_v23 = vld [vmem:[#allocation2 + $0x380] sm:$0xff] }
  0x38   :  { %359 = vmatpush.msrb.mxu1 %v264_v27  ;;  %381 = vmatpush.msrb.mxu2 %v163_v29  ;;  %v170_v24 = vld [vmem:[#allocation2 + $0x70] sm:$0xff]  ;;  %v212_v25 = vld [vmem:[#allocation2 + $0x1c0] sm:$0xff]  ;;  %v265_v26 = vld [vmem:[#allocation2 + $0x368] sm:$0xff] }
  0x39   :  { %392 = vmatpush.msrb.mxu3 %v238_v34  ;;  %341 = vmatpush.msrb.mxu0 %v210_v36  ;;  %v167_v27 = vld [vmem:[#allocation2 + $0x58] sm:$0xff]  ;;  %v209_v28 = vld [vmem:[#allocation2 + $0x1a8] sm:$0xff]  ;;  %v262_v29 = vld [vmem:[#allocation2 + $0x350] sm:$0xff] }
  0x3a   :  { %360 = vmatpush.msrb.mxu1 %v261_v31  ;;  %382 = vmatpush.msrb.mxu2 %v160_v33  ;;  %v164_v30 = vld [vmem:[#allocation2 + $0x40] sm:$0xff]  ;;  %v206_v31 = vld [vmem:[#allocation2 + $0x190] sm:$0xff]  ;;  %v259_v32 = vld [vmem:[#allocation2 + $0x338] sm:$0xff] }
  0x3b   :  { %393 = vmatpush.msrb.mxu3 %v235_v38  ;;  %342 = vmatpush.msrb.mxu0 %v207_v42  ;;  %v161_v33 = vld [vmem:[#allocation2 + $0x28] sm:$0xff]  ;;  %v256_v34 = vld [vmem:[#allocation2 + $0x320] sm:$0xff] }
  0x3c   :  { %361 = vmatpush.msrb.mxu1 %v258_v35  ;;  %383 = vmatpush.msrb.mxu2 %v157_v37  ;;  %v158_v35 = vld [vmem:[#allocation2 + $0x10] sm:$0xff]  ;;  %v253_v36 = vld [vmem:[#allocation2 + $0x308] sm:$0xff]  ;;  %v81_v37 = vld [vmem:[%s992_s2] sm:$0x7] }
  0x3d   :  { %394 = vmatpush.msrb.mxu3 %v232_v41  ;;  %343 = vmatpush.msrb.mxu0 %v204_v48  ;;  %v83_v38 = vperm.slane %v81_v37, 0  ;;  %v84_v41 = vperm.slane %v81_v37, 1  ;;  %v85_v42 = vperm.slane %v81_v37, 2  ;;  %v534_v37 = vld [vmem:[%s995_s5 + $0x158] sm:$0xff] }
  0x3e   :  { %448 = vmatpush.msra.mxu2 %v251_v39  ;;  %362 = vmatpush.msrb.mxu1 %v255_v40 }
  0x3f   :  { %395 = vmatpush.msrb.mxu3 %v229_v45  ;;  %408 = vmatpush.msra.mxu0 %v298_v50  ;;  %v293_v50 = vld [vmem:[#allocation2 + $0x448] sm:$0xff] }
  0x40   :  { %449 = vmatpush.msra.mxu2 %v248_v43  ;;  %363 = vmatpush.msrb.mxu1 %v252_v44 }
  0x41   :  { %396 = vmatpush.msrb.mxu3 %v226_v49  ;;  %409 = vmatpush.msra.mxu0 %v295_v54  ;;  %v296_v49 = vld [vmem:[#allocation2 + $0x460] sm:$0xff]  ;;  %v505_v54 = vld [vmem:[%s995_s5 + $0x70] sm:$0xff] }
  0x42   :  { %428 = vmatpush.msra.mxu1 %v203_v46  ;;  %450 = vmatpush.msra.mxu2 %v245_v47  ;;  %v299_v47 = vld [vmem:[#allocation2 + $0x478] sm:$0xff] }
  0x43   :  { %397 = vmatpush.msrb.mxu3 %v223_v53  ;;  %410 = vmatpush.msra.mxu0 %v292_v58  ;;  %v290_v53 = vld [vmem:[#allocation2 + $0x430] sm:$0xff]  ;;  %v522_v58 = vld [vmem:[%s995_s5 + $0xf8] sm:$0xff] }
  0x44   :  { %429 = vmatpush.msra.mxu1 %v200_v51  ;;  %451 = vmatpush.msra.mxu2 %v242_v52  ;;  %v506_v51 = vld [vmem:[%s995_s5 + $0x78] sm:$0xff] }
  0x45   :  { %398 = vmatpush.msrb.mxu3 %v220_v57  ;;  %411 = vmatpush.msra.mxu0 %v289_v62  ;;  %v504_v57 = vld [vmem:[%s995_s5 + $0x68] sm:$0xff] }
  0x46   :  { %430 = vmatpush.msra.mxu1 %v197_v55  ;;  %452 = vmatpush.msra.mxu2 %v239_v56  ;;  %v287_v56 = vld [vmem:[#allocation2 + $0x418] sm:$0xff]  ;;  %v281_v62 = vld [vmem:[#allocation2 + $0x3e8] sm:$0xff] }
  0x47   :  { %399 = vmatpush.msrb.mxu3 %v217_v61  ;;  %412 = vmatpush.msra.mxu0 %v286_v2  ;;  %v521_v61 = vld [vmem:[%s995_s5 + $0xf0] sm:$0xff]  ;;  %v520_v2 = vld [vmem:[%s995_s5 + $0xe8] sm:$0xff] }
  0x48   :  { %431 = vmatpush.msra.mxu1 %v194_v59  ;;  %453 = vmatpush.msra.mxu2 %v236_v60  ;;  %v284_v59 = vld [vmem:[#allocation2 + $0x400] sm:$0xff] }
  0x49   :  { %400 = vmatpush.msrb.mxu3 %v214_v1  ;;  %413 = vmatpush.msra.mxu0 %v283_v6  ;;  %v503_v60 = vld [vmem:[%s995_s5 + $0x60] sm:$0xff]  ;;  %v501_v1 = vld [vmem:[%s995_s5 + $0x50] sm:$0xff] }
  0x4a   :  { %432 = vmatpush.msra.mxu1 %v191_v63  ;;  %454 = vmatpush.msra.mxu2 %v233_v0  ;;  %v502_v63 = vld [vmem:[%s995_s5 + $0x58] sm:$0xff]  ;;  %v278_v0 = vld [vmem:[#allocation2 + $0x3d0] sm:$0xff]  ;;  %v272_v6 = vld [vmem:[#allocation2 + $0x3a0] sm:$0xff] }
  0x4b   :  { %401 = vmatpush.msrb.mxu3 %v211_v5  ;;  %414 = vmatpush.msra.mxu0 %v280_v10  ;;  %v519_v5 = vld [vmem:[%s995_s5 + $0xe0] sm:$0xff]  ;;  %v498_v10 = vld [vmem:[%s995_s5 + $0x38] sm:$0xff] }
  0x4c   :  { %433 = vmatpush.msra.mxu1 %v188_v3  ;;  %455 = vmatpush.msra.mxu2 %v230_v4  ;;  %v275_v3 = vld [vmem:[#allocation2 + $0x3b8] sm:$0xff]  ;;  %v500_v4 = vld [vmem:[%s995_s5 + $0x48] sm:$0xff] }
  0x4d   :  { %402 = vmatpush.msrb.mxu3 %v208_v9  ;;  %415 = vmatpush.msra.mxu0 %v277_v14  ;;  %v269_v9 = vld [vmem:[#allocation2 + $0x388] sm:$0xff]  ;;  %v260_v14 = vld [vmem:[#allocation2 + $0x340] sm:$0xff] }
  0x4e   :  { %434 = vmatpush.msra.mxu1 %v185_v7  ;;  %456 = vmatpush.msra.mxu2 %v227_v8  ;;  %v499_v7 = vld [vmem:[%s995_s5 + $0x40] sm:$0xff]  ;;  %v518_v8 = vld [vmem:[%s995_s5 + $0xd8] sm:$0xff] }
  0x4f   :  { %403 = vmatpush.msrb.mxu3 %v205_v13  ;;  %416 = vmatpush.msra.mxu0 %v274_v17  ;;  %v263_v13 = vld [vmem:[#allocation2 + $0x358] sm:$0xff]  ;;  %v497_v17 = vld [vmem:[%s995_s5 + $0x30] sm:$0xff] }
  0x50   :  { %435 = vmatpush.msra.mxu1 %v182_v11  ;;  %457 = vmatpush.msra.mxu2 %v224_v12  ;;  %v517_v11 = vld [vmem:[%s995_s5 + $0xd0] sm:$0xff] }
  0x51   :  { %417 = vmatpush.msra.mxu0 %v271_v20  ;;  %v266_v12 = vld [vmem:[#allocation2 + $0x370] sm:$0xff]  ;;  %v515_v20 = vld [vmem:[%s995_s5 + $0xc0] sm:$0xff] }
  0x52   :  { %436 = vmatpush.msra.mxu1 %v179_v15  ;;  %458 = vmatpush.msra.mxu2 %v221_v16  ;;  %v257_v15 = vld [vmem:[#allocation2 + $0x328] sm:$0xff]  ;;  %v254_v16 = vld [vmem:[#allocation2 + $0x310] sm:$0xff] }
  0x53   :  { %418 = vmatpush.msra.mxu0 %v268_v23  ;;  %v494_v23 = vld [vmem:[%s995_s5 + $0x18] sm:$0xff] }
  0x54   :  { %437 = vmatpush.msra.mxu1 %v176_v18  ;;  %459 = vmatpush.msra.mxu2 %v218_v19  ;;  %v516_v18 = vld [vmem:[%s995_s5 + $0xc8] sm:$0xff] }
  0x55   :  { %419 = vmatpush.msra.mxu0 %v265_v26  ;;  %v496_v19 = vld [vmem:[%s995_s5 + $0x28] sm:$0xff] }
  0x56   :  { %438 = vmatpush.msra.mxu1 %v173_v21  ;;  %460 = vmatpush.msra.mxu2 %v215_v22  ;;  %v495_v21 = vld [vmem:[%s995_s5 + $0x20] sm:$0xff]  ;;  %v514_v22 = vld [vmem:[%s995_s5 + $0xb8] sm:$0xff]  ;;  %v512_v26 = vld [vmem:[%s995_s5 + $0xa8] sm:$0xff] }
  0x57   :  { %420 = vmatpush.msra.mxu0 %v262_v29  ;;  %v511_v29 = vld [vmem:[%s995_s5 + $0xa0] sm:$0xff] }
  0x58   :  { %439 = vmatpush.msra.mxu1 %v170_v24  ;;  %461 = vmatpush.msra.mxu2 %v212_v25  ;;  %v513_v24 = vld [vmem:[%s995_s5 + $0xb0] sm:$0xff] }
  0x59   :  { %421 = vmatpush.msra.mxu0 %v259_v32  ;;  %v493_v25 = vld [vmem:[%s995_s5 + $0x10] sm:$0xff]  ;;  %v510_v32 = vld [vmem:[%s995_s5 + $0x98] sm:$0xff] }
  0x5a   :  { %440 = vmatpush.msra.mxu1 %v167_v27  ;;  %462 = vmatpush.msra.mxu2 %v209_v28  ;;  %v538_v27 = vld [vmem:[%s995_s5 + $0x178] sm:$0xff]  ;;  %v492_v28 = vld [vmem:[%s995_s5 + $0x8] sm:$0xff] }
  0x5b   :  { %422 = vmatpush.msra.mxu0 %v256_v34  ;;  %v509_v34 = vld [vmem:[%s995_s5 + $0x90] sm:$0xff] }
  0x5c   :  { %441 = vmatpush.msra.mxu1 %v164_v30  ;;  %463 = vmatpush.msra.mxu2 %v206_v31  ;;  %v537_v30 = vld [vmem:[%s995_s5 + $0x170] sm:$0xff]  ;;  %v491_v31 = vld [vmem:[%s995_s5] sm:$0xff] }
  0x5d   :  { %423 = vmatpush.msra.mxu0 %v253_v36  ;;  %v508_v36 = vld [vmem:[%s995_s5 + $0x88] sm:$0xff] }
  0x5e   :  { %442 = vmatpush.msra.mxu1 %v161_v33  ;;  %v536_v33 = vld [vmem:[%s995_s5 + $0x168] sm:$0xff] }
  0x60   :  { %443 = vmatpush.msra.mxu1 %v158_v35  ;;  %v535_v35 = vld [vmem:[%s995_s5 + $0x160] sm:$0xff] }
  0x9a   :  { %v110_v39 = vpop.f32.mrf.mxu0 }
  0x9b   :  { %v111_v40 = vadd.f32 %v110_v39, %v83_v38  ;;  %v507_v38 = vld [vmem:[%s995_s5 + $0x80] sm:$0xff]  ;;  %v533_v39 = vld [vmem:[%s995_s5 + $0x150] sm:$0xff] }
  0x9d   :  { %627 = vtanh.f32 %v111_v40  ;;  %v532_v40 = vld [vmem:[%s995_s5 + $0x148] sm:$0xff] }
  0x9e   :  { %v130_v43 = vpop.f32.mrf.mxu1 }
  0x9f   :  { %v131_v44 = vadd.f32 %v130_v43, %v84_v41  ;;  %v531_v41 = vld [vmem:[%s995_s5 + $0x140] sm:$0xff] }
  0xa0   :  { %v150_v45 = vpop.f32.mrf.mxu2  ;;  %v300_v43 = vld [vmem:[%s994_s4] sm:$0x7] }
  0xa1   :  { %v151_v46 = vadd.f32 %v150_v45, %v85_v42  ;;  %629 = vtanh.f32 %v131_v44  ;;  %v530_v42 = vld [vmem:[%s995_s5 + $0x138] sm:$0xff]  ;;  %v529_v44 = vld [vmem:[%s995_s5 + $0x130] sm:$0xff]  ;;  %v528_v45 = vld [vmem:[%s995_s5 + $0x128] sm:$0xff] }
  0xa3   :  { %v628_v48 = vpop.eup %627  ;;  %631 = vtanh.f32 %v151_v46  ;;  %v302_v46 = vperm.slane %v300_v43, 0 }
  0xa4   :  { %324 = vmatmul.f32.vlgmr.msra.gmra.mxu3 %v628_v48  ;;  %384 = vmatmul.f32.vlgmr.msrb.gmra.mxu2 %v628_v48 }
  0xa5   :  { %468 = vmatpush.msra.mxu3 %v299_v47  ;;  %583 = vmatpush.msrb.mxu2 %v538_v27 }
  0xa7   :  { %v630_v52 = vpop.eup %629  ;;  %469 = vmatpush.msra.mxu3 %v296_v49  ;;  %584 = vmatpush.msrb.mxu2 %v537_v30  ;;  %v527_v49 = vld [vmem:[%s995_s5 + $0x120] sm:$0xff] }
  0xa8   :  { %344 = vmatmul.f32.vlgmr.msrb.gmra.mxu0 %v630_v52 }
  0xa9   :  { %v632_v55 = vpop.eup %631  ;;  %470 = vmatpush.msra.mxu3 %v293_v50  ;;  %543 = vmatpush.msrb.mxu0 %v506_v51  ;;  %v526_v51 = vld [vmem:[%s995_s5 + $0x118] sm:$0xff] }
  0xaa   :  { %364 = vmatmul.f32.vlgmr.msrb.gmra.mxu1 %v632_v55  ;;  %585 = vmatpush.msrb.mxu2 %v536_v33 }
  0xab   :  { %471 = vmatpush.msra.mxu3 %v290_v53  ;;  %544 = vmatpush.msrb.mxu0 %v505_v54  ;;  %v525_v54 = vld [vmem:[%s995_s5 + $0x110] sm:$0xff] }
  0xac   :  { %404 = vmatmul.f32.vlgmr.msrb.gmra.mxu3 %v630_v52  ;;  %464 = vmatmul.f32.vlgmr.msra.gmra.mxu2 %v630_v52  ;;  %v303_v52 = vperm.slane %v300_v43, 1 }
  0xad   :  { %472 = vmatpush.msra.mxu3 %v287_v56  ;;  %545 = vmatpush.msrb.mxu0 %v504_v57  ;;  %v524_v57 = vld [vmem:[%s995_s5 + $0x108] sm:$0xff] }
  0xae   :  { %563 = vmatpush.msrb.mxu1 %v522_v58  ;;  %586 = vmatpush.msrb.mxu2 %v535_v35 }
  0xaf   :  { %473 = vmatpush.msra.mxu3 %v284_v59  ;;  %546 = vmatpush.msrb.mxu0 %v503_v60  ;;  %v523_v59 = vld [vmem:[%s995_s5 + $0x100] sm:$0xff] }
  0xb0   :  { %424 = vmatmul.f32.vlgmr.msra.gmra.mxu0 %v632_v55  ;;  %564 = vmatpush.msrb.mxu1 %v521_v61 }
  0xb1   :  { %474 = vmatpush.msra.mxu3 %v281_v62  ;;  %547 = vmatpush.msrb.mxu0 %v502_v63 }
  0xb2   :  { %444 = vmatmul.f32.vlgmr.msra.gmra.mxu1 %v628_v48  ;;  %587 = vmatpush.msrb.mxu2 %v534_v37 }
  0xb3   :  { %475 = vmatpush.msra.mxu3 %v278_v0  ;;  %548 = vmatpush.msrb.mxu0 %v501_v1 }
  0xb4   :  { %565 = vmatpush.msrb.mxu1 %v520_v2  ;;  %588 = vmatpush.msrb.mxu2 %v533_v39 }
  0xb5   :  { %476 = vmatpush.msra.mxu3 %v275_v3  ;;  %549 = vmatpush.msrb.mxu0 %v500_v4  ;;  %v304_v3 = vperm.slane %v300_v43, 2 }
  0xb6   :  { %566 = vmatpush.msrb.mxu1 %v519_v5  ;;  %589 = vmatpush.msrb.mxu2 %v532_v40 }
  0xb7   :  { %477 = vmatpush.msra.mxu3 %v272_v6  ;;  %550 = vmatpush.msrb.mxu0 %v499_v7 }
  0xb8   :  { %567 = vmatpush.msrb.mxu1 %v518_v8  ;;  %590 = vmatpush.msrb.mxu2 %v531_v41 }
  0xb9   :  { %478 = vmatpush.msra.mxu3 %v269_v9  ;;  %551 = vmatpush.msrb.mxu0 %v498_v10 }
  0xba   :  { %568 = vmatpush.msrb.mxu1 %v517_v11  ;;  %591 = vmatpush.msrb.mxu2 %v530_v42  ;;  %v626_v11 = vld [vmem:[%s996_s6] ss:$0 sm:$0xff] }
  0xbb   :  { %479 = vmatpush.msra.mxu3 %v266_v12  ;;  %552 = vmatpush.msrb.mxu0 %v497_v17 }
  0xbc   :  { %569 = vmatpush.msrb.mxu1 %v516_v18  ;;  %592 = vmatpush.msrb.mxu2 %v529_v44 }
  0xbd   :  { %480 = vmatpush.msra.mxu3 %v263_v13  ;;  %553 = vmatpush.msrb.mxu0 %v496_v19 }
  0xbe   :  { %570 = vmatpush.msrb.mxu1 %v515_v20  ;;  %593 = vmatpush.msrb.mxu2 %v528_v45 }
  0xbf   :  { %481 = vmatpush.msra.mxu3 %v260_v14  ;;  %554 = vmatpush.msrb.mxu0 %v495_v21 }
  0xc0   :  { %571 = vmatpush.msrb.mxu1 %v514_v22  ;;  %594 = vmatpush.msrb.mxu2 %v527_v49 }
  0xc1   :  { %482 = vmatpush.msra.mxu3 %v257_v15  ;;  %555 = vmatpush.msrb.mxu0 %v494_v23 }
  0xc2   :  { %572 = vmatpush.msrb.mxu1 %v513_v24  ;;  %595 = vmatpush.msrb.mxu2 %v526_v51 }
  0xc3   :  { %483 = vmatpush.msra.mxu3 %v254_v16  ;;  %556 = vmatpush.msrb.mxu0 %v493_v25 }
  0xc4   :  { %484 = vmatmul.f32.vlgmr.msra.gmra.mxu3 %v632_v55  ;;  %573 = vmatpush.msrb.mxu1 %v512_v26 }
  0xc5   :  { %557 = vmatpush.msrb.mxu0 %v492_v28  ;;  %596 = vmatpush.msrb.mxu2 %v525_v54 }
  0xc6   :  { %574 = vmatpush.msrb.mxu1 %v511_v29 }
  0xc7   :  { %558 = vmatpush.msrb.mxu0 %v491_v31  ;;  %597 = vmatpush.msrb.mxu2 %v524_v57 }
  0xc8   :  { %575 = vmatpush.msrb.mxu1 %v510_v32 }
  0xc9   :  { %598 = vmatpush.msrb.mxu2 %v523_v59 }
  0xca   :  { %576 = vmatpush.msrb.mxu1 %v509_v34 }
  0xcc   :  { %577 = vmatpush.msrb.mxu1 %v508_v36 }
  0xce   :  { %578 = vmatpush.msrb.mxu1 %v507_v38 }
 0x125   :  { %v345_v47 = vpop.f32.mrf.mxu0 }
 0x127   :  { %v325_v48 = vpop.f32.mrf.mxu3  ;;  %v365_v55 = vpop.f32.mrf.mxu1 }
 0x128   :  { %v326_v50 = vadd.f32 %v325_v48, %v302_v46  ;;  %v385_v56 = vpop.f32.mrf.mxu2 }
 0x129   :  { %v386_v60 = vadd.f32 %v385_v56, %v303_v52 }
 0x12a   :  { %v346_v53 = vadd.f32 %v345_v47, %v326_v50 }
 0x12c   :  { %v366_v58 = vadd.f32 %v365_v55, %v346_v53 }
 0x12d   :  { %v425_v62 = vpop.f32.mrf.mxu0 }
 0x12e   :  { %633 = vtanh.f32 %v366_v58 }
 0x12f   :  { %v405_v61 = vpop.f32.mrf.mxu3  ;;  %v445_v4 = vpop.f32.mrf.mxu1 }
 0x130   :  { %v406_v63 = vadd.f32 %v405_v61, %v386_v60  ;;  %v446_v5 = vadd.f32 %v445_v4, %v304_v3  ;;  %v465_v6 = vpop.f32.mrf.mxu2 }
 0x132   :  { %v426_v0 = vadd.f32 %v425_v62, %v406_v63  ;;  %v466_v7 = vadd.f32 %v465_v6, %v446_v5 }
 0x134   :  { %v634_v1 = vpop.eup %633  ;;  %635 = vtanh.f32 %v426_v0 }
 0x135   :  { %559 = vmatmul.f32.vlgmr.msrb.gmra.mxu0 %v634_v1 }
 0x13a   :  { %v636_v2 = vpop.eup %635 }
 0x13b   :  { %579 = vmatmul.f32.vlgmr.msrb.gmra.mxu1 %v636_v2 }
 0x147   :  { %v485_v8 = vpop.f32.mrf.mxu3 }
 0x148   :  { %v486_v9 = vadd.f32 %v485_v8, %v466_v7 }
 0x14a   :  { %637 = vtanh.f32 %v486_v9 }
 0x150   :  { %v638_v10 = vpop.eup %637 }
 0x151   :  { %599 = vmatmul.f32.vlgmr.msrb.gmra.mxu2 %v638_v10 }
 0x1b2   :  { %v560_v12 = vpop.f32.mrf.mxu0 }
 0x1b3   :  { %v561_v14 = vadd.f32 %v626_v11, %v560_v12 }
 0x1b8   :  { %v580_v13 = vpop.f32.mrf.mxu1 }
 0x1b9   :  { %v581_v15 = vadd.f32 %v580_v13, %v561_v14 }
 0x1d4   :  { %v600_v16 = vpop.f32.mrf.mxu2 }
 0x1d5   :  { %v601_v17 = vadd.f32 %v600_v16, %v581_v15 }
 0x1d7   :  { %606 = vrot.lane.b32.xlu0 %v601_v17, %s668_s13  ;;  %604 = vst.msk [vmem:[%s997_s7] sm:$0xff] %vm603_vm1, %v601_v17 }
 0x249   :  { %v607_v18 = vpop.permute.xlu0 %606 }
 0x24a   :  { %609 = vst.msk [vmem:[%s998_s8] sm:$0xff] %vm603_vm1, %v607_v18 }
 0x24b   :  { %618 = vsyncpa [#allocation3], 1 }

</bundles_post_ra>
